<compile_context>
chip_gen: v7x
topology: tpu7x:2x2x1
jax: 0.10.0
libtpu: 0.0.40
codegen_flags: <defaults>
</compile_context>

<pallas_src>
import functools

import jax
import jax.numpy as jnp
from jax.experimental import pallas as pl
from jax.experimental.pallas import tpu as pltpu


def _round_up(v, m):
    return ((v + m - 1) // m) * m


@functools.lru_cache(maxsize=None)
def _tpu_generation():
    """Best-effort TPU generation detection (0 when unknown)."""
    try:
        kind = jax.devices()[0].device_kind.lower()
    except Exception:  # pragma: no cover - defensive
        return 0
    for g in (7, 6, 5, 4):
        if f"v{g}" in kind:
            return g
    return 0


def _tile_caps():
    """(cap_m, cap_n, cap_k, vmem_limit_bytes) per TPU generation."""
    gen = _tpu_generation()
    if gen >= 7:
        # 64 MiB VMEM per TC, 3.2 TB/s HBM: moderate tiles already reach
        # roofline; keep headroom under the 32 MiB scoped default.
        return 512, 512, 1024, None
    if gen == 6:
        # 128 MiB VMEM, single TC: go big and raise the 32 MiB scoped default.
        return 1024, 1024, 1024, 64 << 20
    # v5e / unknown: 16 MiB default scoped VMEM; 512-class f32 tiles fit and
    # map to clean 128x128 MXU passes.
    return 512, 512, 512, None


def _matmul_bias_kernel_inplace(w_ref, x_ref, b_ref, o_ref):
    """f32 output: accumulate straight into the resident output block."""
    k = pl.program_id(2)

    @pl.when(k == 0)
    def _():
        o_ref[...] = jnp.zeros_like(o_ref)

    o_ref[...] += jnp.dot(
        w_ref[...], x_ref[...], preferred_element_type=jnp.float32
    )

    @pl.when(k == pl.num_programs(2) - 1)
    def _():
        # Bias add on the VPU (free under MXU/DMA slack).
        o_ref[...] += b_ref[...]


def _matmul_bias_kernel_scratch(w_ref, x_ref, b_ref, o_ref, acc_ref):
    """Non-f32 output: f32 VMEM accumulator, cast on finalize."""
    k = pl.program_id(2)

    @pl.when(k == 0)
    def _():
        acc_ref[...] = jnp.zeros_like(acc_ref)

    acc_ref[...] += jnp.dot(
        w_ref[...], x_ref[...], preferred_element_type=jnp.float32
    )

    @pl.when(k == pl.num_programs(2) - 1)
    def _():
        o_ref[...] = (acc_ref[...] + b_ref[...]).astype(o_ref.dtype)


@jax.jit
def broadcasted_linear(W, x, b):
    """y = W @ x + b (PyTorch broadcasting of the 1-D bias over columns)."""
    M, K = W.shape            # (in_features, out_features)
    K2, N = x.shape           # (out_features, N)
    assert K == K2, "x must have leading dim == out_features"
    assert b.shape == (N,), "torch broadcast of b needs x.shape[1] == out_features"

    cap_m, cap_n, cap_k, vmem_limit = _tile_caps()
    gen = _tpu_generation()

    # Tile (and later pad) a dim only when it exceeds the cap; otherwise pass
    # the full, unpadded extent as the block size (legal even below (8,128)),
    # avoiding the extra HBM pad/slice passes that dominate at toy sizes.
    def _dim(d, cap):
        if d <= cap:
            return d, d                      # full-extent block, no padding
        return cap, _round_up(d, cap)        # cap is a multiple of 8 and 128

    tm, M_pad = _dim(M, cap_m)
    tn, N_pad = _dim(N, cap_n)
    tk, K_pad = _dim(K, cap_k)

    # v7x has 2 TensorCores: guarantee >= 2 parallel blocks on non-trivial
    # problems so the "parallel" axes actually shard across cores.
    if (gen >= 7
            and (M_pad // tm) * (N_pad // tn) < 2
            and M >= 16
            and M * N * K >= (1 << 22)):
        tm = _round_up((M + 1) // 2, 8)
        M_pad = 2 * tm

    # Zero-pad only the dims that are tiled (math unchanged in the top-left
    # (M, N) block: padded K contributes zeros to the dot product).
    W_p = W if (M_pad, K_pad) == (M, K) else jnp.pad(
        W, ((0, M_pad - M), (0, K_pad - K)))
    x_p = x if (K_pad, N_pad) == (K, N) else jnp.pad(
        x, ((0, K_pad - K), (0, N_pad - N)))
    b_p = b if N_pad == N else jnp.pad(b, (0, N_pad - N))
    b2 = b_p.reshape(1, N_pad)

    grid = (M_pad // tm, N_pad // tn, K_pad // tk)
    gi, gj, _gk = grid

    out_dtype = jnp.promote_types(W.dtype, x.dtype)
    if out_dtype == jnp.float32:
        kernel = _matmul_bias_kernel_inplace
        scratch_shapes = []
    else:
        kernel = _matmul_bias_kernel_scratch
        scratch_shapes = [pltpu.VMEM((tm, tn), jnp.float32)]

    # Advisory cost: count operand re-streaming (W read gj times, x read gi
    # times), not a single read of each array.
    elem_bytes = jnp.dtype(out_dtype).itemsize
    cost = pl.CostEstimate(
        flops=2 * M_pad * N_pad * K_pad,
        transcendentals=0,
        bytes_accessed=elem_bytes * (M_pad * K_pad * gj
                                     + K_pad * N_pad * gi
                                     + M_pad * N_pad
                                     + N_pad),
    )

    cp_kwargs = dict(dimension_semantics=("parallel", "parallel", "arbitrary"))
    if vmem_limit is not None:
        cp_kwargs["vmem_limit_bytes"] = vmem_limit

    y_p = pl.pallas_call(
        kernel,
        out_shape=jax.ShapeDtypeStruct((M_pad, N_pad), out_dtype),
        grid_spec=pltpu.PrefetchScalarGridSpec(
            num_scalar_prefetch=0,
            grid=grid,
            in_specs=[
                pl.BlockSpec((tm, tk), lambda i, j, k: (i, k)),   # W tile
                pl.BlockSpec((tk, tn), lambda i, j, k: (k, j)),   # x tile
                pl.BlockSpec((1, tn), lambda i, j, k: (0, j)),    # bias row
            ],
            out_specs=pl.BlockSpec((tm, tn), lambda i, j, k: (i, j)),
            scratch_shapes=scratch_shapes,
        ),
        compiler_params=pltpu.CompilerParams(**cp_kwargs),
        cost_estimate=cost,
    )(W_p, x_p, b2)

    if (M_pad, N_pad) != (M, N):
        y_p = y_p[:M, :N]
    return y_p


if __name__ == "__main__":
    in_features = 32
    out_features = 32
    N = out_features  # required by torch bias broadcasting in `W @ x + b`

    key = jax.random.PRNGKey(0)
    kW, kb, kx = jax.random.split(key, 3)

    # Deterministic parameter init mirroring torch.rand (uniform [0, 1)).
    W = jax.random.uniform(kW, (in_features, out_features), dtype=jnp.float32)
    b = jax.random.uniform(kb, (out_features,), dtype=jnp.float32)
    x = jax.random.uniform(kx, (out_features, N), dtype=jnp.float32)

    # NOTE: distdl's Broadcast(P_0 -> P_x) is identity on a single device,
    # so W and b are used directly.

    y = broadcasted_linear(W, x, b)
    y = jax.block_until_ready(y)

    # Reference check against plain JAX (same semantics as torch W @ x + b).
    y_ref = W @ x + b
    assert y.shape == (in_features, N)
    assert jnp.allclose(y, y_ref, atol=1e-5, rtol=1e-5), "mismatch vs reference"

    print("KERNEL_OK")
</pallas_src>

<mosaic_0001>
module attributes {stable_mosaic.version = 11 : i64} {
  func.func @_matmul_bias_kernel_inplace(%arg0: i32, %arg1: i32, %arg2: i32, %arg3: memref<32x32xf32, #tpu.memory_space<vmem>>, %arg4: memref<32x32xf32, #tpu.memory_space<vmem>>, %arg5: memref<1x32xf32, #tpu.memory_space<vmem>>, %arg6: memref<32x32xf32, #tpu.memory_space<vmem>>) attributes {dimension_semantics = [#tpu.dimension_semantics<parallel>, #tpu.dimension_semantics<parallel>, #tpu.dimension_semantics<arbitrary>], iteration_bounds = array<i64: 1, 1, 1>, scalar_prefetch = 0 : i64, scratch_operands = 0 : i64, tpu.core_type = #tpu.core_type<tc>, window_params = [{transform_indices = @transform_0, window_bounds = array<i64: 32, 32>}, {transform_indices = @transform_1, window_bounds = array<i64: 32, 32>}, {transform_indices = @transform_2, window_bounds = array<i64: 1, 32>}, {transform_indices = @transform_3, window_bounds = array<i64: 32, 32>}]} {
    %c0_i32 = arith.constant 0 : i32
    %0 = arith.cmpi eq, %arg2, %c0_i32 : i32
    %1 = arith.extui %0 : i1 to i32
    %c0_i32_0 = arith.constant 0 : i32
    %2 = arith.cmpi ne, %1, %c0_i32_0 : i32
    scf.if %2 {
      %cst_10 = arith.constant 0.000000e+00 : f32
      %12 = vector.broadcast %cst_10 : f32 to vector<32x32xf32>
      %c0_11 = arith.constant 0 : index
      %c0_12 = arith.constant 0 : index
      %13 = vector.load %arg6[%c0_11, %c0_12] : memref<32x32xf32, #tpu.memory_space<vmem>>, vector<32x32xf32>
      tpu.vector_store %arg6[%c0_11, %c0_12], %12 {strides = array<i32>} : memref<32x32xf32, #tpu.memory_space<vmem>>, vector<32x32xf32>,
    } else {
    }
    %c0 = arith.constant 0 : index
    %c0_1 = arith.constant 0 : index
    %3 = vector.load %arg6[%c0, %c0_1] : memref<32x32xf32, #tpu.memory_space<vmem>>, vector<32x32xf32>
    %c0_2 = arith.constant 0 : index
    %c0_3 = arith.constant 0 : index
    %4 = vector.load %arg3[%c0_2, %c0_3] : memref<32x32xf32, #tpu.memory_space<vmem>>, vector<32x32xf32>
    %c0_4 = arith.constant 0 : index
    %c0_5 = arith.constant 0 : index
    %5 = vector.load %arg4[%c0_4, %c0_5] : memref<32x32xf32, #tpu.memory_space<vmem>>, vector<32x32xf32>
    %cst = arith.constant dense<0.000000e+00> : vector<32x32xf32>
    %6 = tpu.matmul %4, %5, %cst {dimension_numbers = #tpu.dot_dimension_numbers<[1], [0], [0], [1], [0, 0, 1, 1], [], []>} : vector<32x32xf32>, vector<32x32xf32>, vector<32x32xf32> -> vector<32x32xf32>
    %7 = arith.addf %3, %6 : vector<32x32xf32>
    %c0_6 = arith.constant 0 : index
    %c0_7 = arith.constant 0 : index
    %8 = vector.load %arg6[%c0_6, %c0_7] : memref<32x32xf32, #tpu.memory_space<vmem>>, vector<32x32xf32>
    tpu.vector_store %arg6[%c0_6, %c0_7], %7 {strides = array<i32>} : memref<32x32xf32, #tpu.memory_space<vmem>>, vector<32x32xf32>,
    %c0_i32_8 = arith.constant 0 : i32
    %9 = arith.cmpi eq, %arg2, %c0_i32_8 : i32
    %10 = arith.extui %9 : i1 to i32
    %c0_i32_9 = arith.constant 0 : i32
    %11 = arith.cmpi ne, %10, %c0_i32_9 : i32
    scf.if %11 {
      %c0_10 = arith.constant 0 : index
      %c0_11 = arith.constant 0 : index
      %12 = vector.load %arg6[%c0_10, %c0_11] : memref<32x32xf32, #tpu.memory_space<vmem>>, vector<32x32xf32>
      %c0_12 = arith.constant 0 : index
      %c0_13 = arith.constant 0 : index
      %13 = vector.load %arg5[%c0_12, %c0_13] : memref<1x32xf32, #tpu.memory_space<vmem>>, vector<1x32xf32>
      %14 = vector.broadcast %13 : vector<1x32xf32> to vector<32x32xf32>
      %15 = arith.addf %12, %14 : vector<32x32xf32>
      %c0_14 = arith.constant 0 : index
      %c0_15 = arith.constant 0 : index
      %16 = vector.load %arg6[%c0_14, %c0_15] : memref<32x32xf32, #tpu.memory_space<vmem>>, vector<32x32xf32>
      tpu.vector_store %arg6[%c0_14, %c0_15], %15 {strides = array<i32>} : memref<32x32xf32, #tpu.memory_space<vmem>>, vector<32x32xf32>,
    } else {
    }
    return
  }
  func.func @transform_0(%arg0: i32, %arg1: i32, %arg2: i32) -> (i32, i32) {
    %c0_i32 = arith.constant 0 : i32
    return %arg0, %arg2 : i32, i32
  }
  func.func @transform_1(%arg0: i32, %arg1: i32, %arg2: i32) -> (i32, i32) {
    %c0_i32 = arith.constant 0 : i32
    return %arg2, %arg1 : i32, i32
  }
  func.func @transform_2(%arg0: i32, %arg1: i32, %arg2: i32) -> (i32, i32) {
    %c0_i32 = arith.constant 0 : i32
    %c0_i32_0 = arith.constant 0 : i32
    return %c0_i32, %arg1 : i32, i32
  }
  func.func @transform_3(%arg0: i32, %arg1: i32, %arg2: i32) -> (i32, i32) {
    %c0_i32 = arith.constant 0 : i32
    return %arg0, %arg1 : i32, i32
  }
}

</mosaic_0001>

<bundles_post_ra>
// kernel: broadcasted_linear.1
= control target key start
LH: loop header
LB: loop body
LE: loop exit
PB: predicated region body
PF: predicated region fallthrough
CT: control target
= control target key end

     0   :  { %8 = vsyncpa [#allocation3], 0  ;;  %s417_s0 = inlined_call_operand.hbm [shape: f32[32,32], index: 0, kind: input, shape index: {}]   ;;  %s418_s1 = inlined_call_operand.hbm [shape: f32[32,32], index: 1, kind: input, shape index: {}]   ;;  %s419_s2 = inlined_call_operand.vmem [shape: f32[1,32], index: 2, kind: input, shape index: {}]   ;;  %s420_s3 = inlined_call_operand.hbm [shape: f32[32,32], index: 3, kind: output, shape index: {}]  }
   0x1   :  { %9 = vsyncpa [#allocation6], 0 }
   0x2   :  { %10 = vsyncpa [#allocation4], 0  ;;  %s327_s12 = smov [#allocation2]   ;;  %s255_s16 = scalar_lea.hbm %s417_s0, 512 }
   0x3   :  { %s16_s13 = sshll.u32 %s327_s12, 4  ;;  %p256_p0 = scmp.ne.s32.totalorder %s417_s0, %s255_s16  ;;  %s17_s13 = int_to_ptr.vmem [resolvable:$true] %s16_s13 }
   0x4   :  { %p259_p1 = scmp.lt.u32.totalorder %s255_s16, %s417_s0 }
   0x6   :  { %p261_p2 = pnand %p259_p1, %p256_p0 }
   0x8   :  { %264 = shalt.err (!%p261_p2)
}
   0x9   :  { %s265_s21 = scalar_lea.vmem %s17_s13, 512  ;;  %p270_p4 = scmp.lt.s32.totalorder %s17_s13, %s17_s13 }
   0xa   :  { %p266_p3 = scmp.ne.s32.totalorder %s17_s13, %s265_s21  ;;  %p271_p5 = scmp.lt.s32.totalorder %s265_s21, %s265_s21 }
   0xc   :  { %p272_p6 = por %p271_p5, %p270_p4 }
   0xe   :  { %p273_p7 = pnand %p272_p6, %p266_p3 }
  0x10   :  { %276 = shalt.err (!%p273_p7)
}
  0x11   :  { %s328_s22 = smov 128   ;;  %s329_s23 = smov 8  }
  0x12   :  { %22 = dma.hbm_to_vmem [thread:$0]  %s417_s0, 512, %s17_s13, [#allocation3], %s328_s22, %s328_s22, %s329_s23  }
  0x13   :  { %s330_s26 = smov [#allocation5]   ;;  %s277_s30 = scalar_lea.hbm %s418_s1, 512 }
  0x14   :  { %s28_s27 = sshll.u32 %s330_s26, 4  ;;  %p278_p8 = scmp.ne.s32.totalorder %s418_s1, %s277_s30  ;;  %s29_s27 = int_to_ptr.vmem [resolvable:$true] %s28_s27 }
  0x15   :  { %p281_p9 = scmp.lt.u32.totalorder %s277_s30, %s418_s1 }
  0x17   :  { %p283_p10 = pnand %p281_p9, %p278_p8 }
  0x19   :  { %286 = shalt.err (!%p283_p10)
}
  0x1a   :  { %s287_s8 = scalar_lea.vmem %s29_s27, 512  ;;  %p292_p12 = scmp.lt.s32.totalorder %s29_s27, %s29_s27 }
  0x1b   :  { %p288_p11 = scmp.ne.s32.totalorder %s29_s27, %s287_s8  ;;  %p293_p13 = scmp.lt.s32.totalorder %s287_s8, %s287_s8 }
  0x1d   :  { %p294_p0 = por %p293_p13, %p292_p12 }
  0x1f   :  { %p295_p1 = pnand %p294_p0, %p288_p11 }
  0x21   :  { %298 = shalt.err (!%p295_p1)
}
  0x22   :  { %34 = dma.hbm_to_vmem [thread:$0]  %s418_s1, 512, %s29_s27, [#allocation6], %s328_s22, %s328_s22, %s329_s23  }
  0x23   :  { %321 = dma.done.wait [#allocation3], 512  }
  0x24   :  { %322 = vsyncadd [#allocation3], 4294966784 }
  0x25   :  { %323 = dma.done.wait [#allocation6], 512  }
  0x26   :  { %324 = vsyncadd [#allocation6], 4294966784  ;;  %vm47_vm0 = vcmask 261120   ;;  %v331_v0 = vmov 0.0   ;;  %v60_v1 = vld [vmem:[#allocation5] sm:$0xff]  ;;  %v61_v2 = vld [vmem:[#allocation5 + $0x8] sm:$0xff] }
  0x27   :  { %49 = vst.msk [vmem:[#allocation7 + $0x8] sm:$0xff] %vm47_vm0, %v331_v0  ;;  %48 = vst.msk [vmem:[#allocation7] sm:$0xff] %vm47_vm0, %v331_v0  ;;  %v62_v3 = vld [vmem:[#allocation5 + $0x10] sm:$0xff]  ;;  %v237_v4 = vpack.c.bf16 %v61_v2, %v60_v1  ;;  %v63_v5 = vld [vmem:[#allocation5 + $0x18] sm:$0xff]  ;;  %s332_s11 = smov [#allocation7]  }
  0x28   :  { %50 = vst.msk [vmem:[#allocation7 + $0x10] sm:$0xff] %vm47_vm0, %v331_v0  ;;  %51 = vst.msk [vmem:[#allocation7 + $0x18] sm:$0xff] %vm47_vm0, %v331_v0  ;;  %v56_v6 = vld [vmem:[#allocation2] sm:$0xff]  ;;  %v58_v7 = vld [vmem:[#allocation2 + $0x10] sm:$0xff]  ;;  %v241_v8 = vpack.c.bf16 %v63_v5, %v62_v3  ;;  %s197_s12 = sshll.u32 %s332_s11, 4  ;;  %s198_s12 = int_to_ptr.vmem [resolvable:$true] %s197_s12 }
  0x29   :  { %231 = vmatprep.mubr.msk.f32.mxu0 %vm47_vm0, %v56_v6  ;;  %234 = vmatprep.mubr.msk.f32.mxu1 %vm47_vm0, %v58_v7  ;;  %v57_v9 = vld [vmem:[#allocation2 + $0x8] sm:$0xff]  ;;  %v59_v10 = vld [vmem:[#allocation2 + $0x18] sm:$0xff]  ;;  %v214_v23 = vld [vmem:[%s419_s2] ss:$0 sm:$0xff]  ;;  %s299_s2 = scalar_lea.vmem %s198_s12, 512  ;;  %p304_p3 = scmp.lt.s32.totalorder %s198_s12, %s198_s12 }
  0x2a   :  { %238 = vmatprep.subr.bf16.mxu0 %v237_v4  ;;  %245 = vmatprep.subr.bf16.mxu1 %v237_v4  ;;  %p300_p2 = scmp.ne.s32.totalorder %s198_s12, %s299_s2  ;;  %p305_p4 = scmp.lt.s32.totalorder %s299_s2, %s299_s2 }
  0x2b   :  { %240 = vmatpush3.bf16.msra.mxu0 %v237_v4  ;;  %247 = vmatpush3.bf16.msra.mxu1 %v237_v4 }
  0x2c   :  { %242 = vmatprep.subr.bf16.mxu0 %v241_v8  ;;  %246 = vmatprep.subr.bf16.mxu1 %v241_v8  ;;  %p306_p5 = por %p305_p4, %p304_p3 }
  0x2e   :  { %v53_v11 = vld [vmem:[#allocation7 + $0x8] sm:$0xff]  ;;  %v52_v13 = vld [vmem:[#allocation7] sm:$0xff]  ;;  %p307_p6 = pnand %p306_p5, %p300_p2 }
  0x2f   :  { %244 = vmatpush3.bf16.msra.mxu0 %v241_v8  ;;  %248 = vmatpush3.bf16.msra.mxu1 %v241_v8  ;;  %v55_v12 = vld [vmem:[#allocation7 + $0x18] sm:$0xff]  ;;  %v54_v14 = vld [vmem:[#allocation7 + $0x10] sm:$0xff] }
  0x32   :  { %232 = vmatmul.mubr.msk.f32.vlgmr.msra.gmra.mrb[0].mxu0 %vm47_vm0, %v57_v9  ;;  %235 = vmatmul.mubr.msk.f32.vlgmr.msra.gmra.mrb[0].mxu1 %vm47_vm0, %v59_v10 }
 0x105   :  { %v233_v15 = vpop.f32.mrb[0].mxu0  ;;  %v236_v16 = vpop.f32.mrb[0].mxu1 }
 0x106   :  { %v163_v17 = vadd.f32 %v233_v15, %v53_v11  ;;  %v165_v18 = vadd.f32 %v236_v16, %v55_v12  ;;  %v143_v19 = vpop.f32.mrb[1].mxu0  ;;  %v153_v20 = vpop.f32.mrb[1].mxu1 }
 0x107   :  { %v162_v21 = vadd.f32 %v143_v19, %v52_v13  ;;  %v164_v22 = vadd.f32 %v153_v20, %v54_v14 }
 0x108   :  { %167 = vst.msk [vmem:[#allocation7 + $0x8] sm:$0xff] %vm47_vm0, %v163_v17  ;;  %169 = vst.msk [vmem:[#allocation7 + $0x18] sm:$0xff] %vm47_vm0, %v165_v18 }
 0x109   :  { %166 = vst.msk [vmem:[#allocation7] sm:$0xff] %vm47_vm0, %v162_v21  ;;  %168 = vst.msk [vmem:[#allocation7 + $0x10] sm:$0xff] %vm47_vm0, %v164_v22 }
 0x10f   :  { %v174_v24 = vld [vmem:[#allocation7 + $0x8] sm:$0xff]  ;;  %v176_v25 = vld [vmem:[#allocation7 + $0x18] sm:$0xff] }
 0x110   :  { %v173_v26 = vld [vmem:[#allocation7] sm:$0xff]  ;;  %v175_v27 = vld [vmem:[#allocation7 + $0x10] sm:$0xff]  ;;  %v185_v28 = vadd.f32 %v214_v23, %v174_v24  ;;  %v187_v29 = vadd.f32 %v214_v23, %v176_v25 }
 0x111   :  { %v184_v30 = vadd.f32 %v214_v23, %v173_v26  ;;  %v186_v31 = vadd.f32 %v214_v23, %v175_v27 }
 0x112   :  { %189 = vst.msk [vmem:[#allocation7 + $0x8] sm:$0xff] %vm47_vm0, %v185_v28  ;;  %191 = vst.msk [vmem:[#allocation7 + $0x18] sm:$0xff] %vm47_vm0, %v187_v29 }
 0x113   :  { %188 = vst.msk [vmem:[#allocation7] sm:$0xff] %vm47_vm0, %v184_v30  ;;  %190 = vst.msk [vmem:[#allocation7 + $0x10] sm:$0xff] %vm47_vm0, %v186_v31 }
 0x114   :  { %310 = shalt.err (!%p307_p6)
}
 0x115   :  { %s311_s15 = scalar_lea.hbm %s420_s3, 512 }
 0x116   :  { %p312_p7 = scmp.ne.s32.totalorder %s420_s3, %s311_s15  ;;  %p315_p8 = scmp.lt.u32.totalorder %s311_s15, %s420_s3 }
 0x118   :  { %p317_p9 = pnand %p315_p8, %p312_p7 }
 0x11a   :  { %320 = shalt.err (!%p317_p9)
}
 0x11b   :  { %203 = dma.vmem_to_hbm [thread:$0]  %s198_s12, 512, %s420_s3, [#allocation4], %s328_s22, %s328_s22, %s329_s23  }
 0x11c   :  { %325 = dma.done.wait [#allocation4], 512  }
 0x11d   :  { %326 = vsyncadd [#allocation4], 4294966784 }
 0x11e   :  { %207 = vsyncpa [#allocation3], 1 }
 0x11f   :  { %208 = vsyncpa [#allocation6], 1 }
 0x120   :  { %209 = vsyncpa [#allocation4], 1 }

</bundles_post_ra>
